<compile_context>
chip_gen: v7x
topology: tpu7x:2x2x1
jax: 0.10.0
libtpu: 0.0.40
codegen_flags: <defaults>
</compile_context>

<pallas_src>
import jax
import jax.numpy as jnp
from jax.experimental import pallas as pl
from jax.experimental.pallas import tpu as pltpu

LANE = 128


def _round_up(n, m):
    return ((n + m - 1) // m) * m


def _pick_batch_tile(B):
    """Adaptive batch tile.

    - multiple of 16 (bf16 packs 16 sublanes per vreg)
    - capped at 512 (multiple of 256 for v6e/v7x MXU rows, 128 for v5e), so any
      B > 512 yields grid >= 2 steps (keeps both v7x TensorCores busy) while the
      double-buffered x/out tiles stay far below the v7x 32 MiB scoped VMEM limit.
    """
    return min(512, _round_up(B, 16))


def _apply_activation(name, h, valid, padded):
    """Activation on a (TB, padded) f32 tile; the first `valid` lanes are real."""
    if name == "relu":
        return jnp.maximum(h, 0.0)
    if name == "sigmoid":
        return jax.nn.sigmoid(h)
    if name == "tanh":
        return jnp.tanh(h)
    if name == "identity":
        return h
    if name == "leaky_relu":
        return jnp.where(h >= 0.0, h, 0.01 * h)
    if name == "softmax":
        # softmax(dim=1): mask padded lanes so they don't pollute the denominator,
        # and use an EUP reciprocal instead of a VPU divide.
        col = jax.lax.broadcasted_iota(jnp.int32, h.shape, 1)
        if valid != padded:
            h = jnp.where(col < valid, h, -jnp.inf)
        m = jnp.max(h, axis=1, keepdims=True)
        e = jnp.exp(h - m)
        if valid != padded:
            e = jnp.where(col < valid, e, 0.0)
        s = jnp.sum(e, axis=1, keepdims=True)
        return e * pl.reciprocal(s, approx=True)
    raise ValueError(f"unknown activation: {name}")


def _make_encoder_kernel(n_layers, activation_list, valid_out_dims, pad_out_dims, head_pad):
    """Kernel factory: closes over the (static) layer structure."""

    def kernel(*refs):
        x_ref = refs[0]
        w_refs = refs[1:1 + n_layers + 1]   # hidden weights + fused mean|log_var head (bf16)
        b_ref = refs[1 + n_layers + 1]      # packed biases (n_layers+1, max_pad), f32
        out_ref = refs[-1]                  # (TB, head_pad) output slab

        b_all = b_ref[...]                  # small, f32, hoisted once
        h = x_ref[...]                      # (TB, D_in_pad) bf16 (streamed narrow)

        for i in range(n_layers):
            w = w_refs[i][...]              # bf16, lane-dense
            lhs = h if h.dtype == w.dtype else h.astype(w.dtype)
            z = jnp.dot(lhs, w, preferred_element_type=jnp.float32)
            z = z + b_all[i:i + 1, :pad_out_dims[i]]          # (1, pad) sublane-broadcast add
            h = _apply_activation(activation_list[i], z,
                                  valid_out_dims[i], pad_out_dims[i])

        # Fused mean|log_var head -> single MXU pass, single lane-dense store.
        w_head = w_refs[n_layers][...]
        lhs = h if h.dtype == w_head.dtype else h.astype(w_head.dtype)
        out = jnp.dot(lhs, w_head, preferred_element_type=jnp.float32)
        out = out + b_all[n_layers:n_layers + 1, :head_pad]
        out_ref[...] = out.astype(out_ref.dtype)

    return kernel


def encoder_forward(x, params, activation_list, *, batch_tile=None,
                    weight_dtype=jnp.bfloat16):
    """
    x: (B, input_dim) f32
    params: {'Ws': [W0, W1, ...] (in, out), 'bs': [b0, b1, ...],
             'Wm': (H_last, L), 'bm': (L,), 'Wv': (H_last, L), 'bv': (L,)}
    Returns (mean, log_var), each (B, latent_dim) f32.
    """
    Ws, bs = params["Ws"], params["bs"]
    n_layers = len(Ws)
    B, d_in = x.shape
    latent = params["Wm"].shape[1]

    in_dims = [w.shape[0] for w in Ws]                 # [d_in, h0, h1, ...]
    out_dims = [w.shape[1] for w in Ws]                # [h0, h1, ...]
    in_pads = [_round_up(d, LANE) for d in in_dims]
    out_pads = [_round_up(d, LANE) for d in out_dims]
    head_pad = _round_up(2 * latent, LANE)
    h_last_pad = out_pads[-1] if n_layers > 0 else in_pads[0]

    # --- pad weights to lane-dense tiles, cast to bf16 for the MXU ---
    # Input-feature rows MUST be zero-padded: padded activation lanes can carry
    # nonzero values (sigmoid(0)=0.5 etc.) and rely on these zero rows.
    padded_Ws = []
    for w, pi, po in zip(Ws, in_pads, out_pads):
        wp = jnp.pad(w, ((0, pi - w.shape[0]), (0, po - w.shape[1])))
        padded_Ws.append(wp.astype(weight_dtype))

    # Fused mean|log_var head: (H_last, 2L) -> (H_last_pad, head_pad)
    w_head = jnp.concatenate([params["Wm"], params["Wv"]], axis=1)
    w_head = jnp.pad(
        w_head, ((0, h_last_pad - w_head.shape[0]), (0, head_pad - w_head.shape[1]))
    ).astype(weight_dtype)

    # --- pack all biases into one lane-dense buffer (f32) ---
    max_pad = max(out_pads + [head_pad])
    b_rows = []
    for b, po in zip(bs, out_pads):
        b_rows.append(jnp.pad(b.astype(jnp.float32), (0, max_pad - b.shape[0])))
    b_head = jnp.concatenate([params["bm"], params["bv"]])
    b_rows.append(jnp.pad(b_head.astype(jnp.float32), (0, max_pad - b_head.shape[0])))
    b_packed = jnp.stack(b_rows, axis=0)               # (n_layers+1, max_pad)

    # --- pad activations: batch to TB multiple, features to 128 multiple ---
    # x is streamed in bf16: the kernel feeds bf16 to the MXU anyway, so this
    # halves the per-step x DMA with identical numerics.
    TB = batch_tile if batch_tile is not None else _pick_batch_tile(B)
    B_pad = _round_up(B, TB)
    x_pad = jnp.pad(x, ((0, B_pad - B), (0, in_pads[0] - d_in))).astype(jnp.bfloat16)

    kernel = _make_encoder_kernel(n_layers, tuple(activation_list),
                                  tuple(out_dims), tuple(out_pads), head_pad)

    weight_inputs = tuple(padded_Ws) + (w_head,)
    inputs = (x_pad,) + weight_inputs + (b_packed,)

    # Batch-tiled x (double-buffered by default); weights/biases are grid-invariant
    # and single-buffered (DMA'd once, half the resident footprint).
    resident = pl.Buffered(1)
    in_specs = [pl.BlockSpec((TB, in_pads[0]), lambda i: (i, 0))]
    for w in weight_inputs:
        in_specs.append(pl.BlockSpec(w.shape, lambda i: (0, 0), pipeline_mode=resident))
    in_specs.append(pl.BlockSpec(b_packed.shape, lambda i: (0, 0), pipeline_mode=resident))

    out = pl.pallas_call(
        kernel,
        grid=(B_pad // TB,),
        in_specs=in_specs,
        out_specs=pl.BlockSpec((TB, head_pad), lambda i: (i, 0)),
        out_shape=jax.ShapeDtypeStruct((B_pad, head_pad), jnp.float32),
        compiler_params=pltpu.CompilerParams(dimension_semantics=("parallel",)),
    )(*inputs)

    mean = out[:B, :latent]
    log_var = out[:B, latent:2 * latent]
    return mean, log_var


def init_params(key, input_dim, hidden_dim, latent_dim):
    dims = [input_dim] + list(hidden_dim)
    n = len(hidden_dim)
    ks = jax.random.split(key, 2 * n + 4)
    scale = 0.1
    Ws, bs = [], []
    for i in range(n):
        Ws.append(scale * jax.random.normal(ks[2 * i], (dims[i], dims[i + 1]), jnp.float32))
        bs.append(scale * jax.random.normal(ks[2 * i + 1], (dims[i + 1],), jnp.float32))
    return {
        "Ws": Ws, "bs": bs,
        "Wm": scale * jax.random.normal(ks[2 * n + 0], (dims[-1], latent_dim), jnp.float32),
        "bm": scale * jax.random.normal(ks[2 * n + 1], (latent_dim,), jnp.float32),
        "Wv": scale * jax.random.normal(ks[2 * n + 2], (dims[-1], latent_dim), jnp.float32),
        "bv": scale * jax.random.normal(ks[2 * n + 3], (latent_dim,), jnp.float32),
    }


if __name__ == "__main__":
    B = 16
    input_dim = 64
    hidden_dim = [48, 32]
    activation_list = ["relu", "tanh"]
    latent_dim = 16

    key = jax.random.PRNGKey(0)
    k_x, k_p = jax.random.split(key, 2)
    x = jax.random.normal(k_x, (B, input_dim), jnp.float32)
    params = init_params(k_p, input_dim, hidden_dim, latent_dim)

    mean, log_var = encoder_forward(x, params, activation_list)
    jax.block_until_ready((mean, log_var))

    # --- pure-JAX fp32 reference (kernel streams/multiplies in bf16 -> modest tolerance) ---
    acts = {
        "relu": lambda v: jnp.maximum(v, 0.0),
        "sigmoid": jax.nn.sigmoid,
        "tanh": jnp.tanh,
        "identity": lambda v: v,
        "leaky_relu": lambda v: jnp.where(v >= 0.0, v, 0.01 * v),
        "softmax": lambda v: jax.nn.softmax(v, axis=1),
    }
    h = x
    for w, b, a in zip(params["Ws"], params["bs"], activation_list):
        h = acts[a](h @ w + b)
    mean_ref = h @ params["Wm"] + params["bm"]
    logvar_ref = h @ params["Wv"] + params["bv"]

    assert mean.shape == (B, latent_dim) and log_var.shape == (B, latent_dim)
    assert jnp.allclose(mean, mean_ref, atol=2e-2), float(jnp.max(jnp.abs(mean - mean_ref)))
    assert jnp.allclose(log_var, logvar_ref, atol=2e-2), float(jnp.max(jnp.abs(log_var - logvar_ref)))

    print("KERNEL_OK")
</pallas_src>

<mosaic_0001>
module attributes {stable_mosaic.version = 11 : i64} {
  func.func @kernel(%arg0: i32, %arg1: memref<16x128xbf16, #tpu.memory_space<vmem>>, %arg2: memref<128x128xbf16, #tpu.memory_space<vmem>>, %arg3: memref<128x128xbf16, #tpu.memory_space<vmem>>, %arg4: memref<128x128xbf16, #tpu.memory_space<vmem>>, %arg5: memref<3x128xf32, #tpu.memory_space<vmem>>, %arg6: memref<16x128xf32, #tpu.memory_space<vmem>>) attributes {dimension_semantics = [#tpu.dimension_semantics<parallel>], iteration_bounds = array<i64: 1>, scalar_prefetch = 0 : i64, scratch_operands = 0 : i64, tpu.core_type = #tpu.core_type<tc>, window_params = [{transform_indices = @transform_0, window_bounds = array<i64: 16, 128>}, {pipeline_mode = #tpu.pipeline_mode<synchronous>, transform_indices = @transform_1, window_bounds = array<i64: 128, 128>}, {pipeline_mode = #tpu.pipeline_mode<synchronous>, transform_indices = @transform_2, window_bounds = array<i64: 128, 128>}, {pipeline_mode = #tpu.pipeline_mode<synchronous>, transform_indices = @transform_3, window_bounds = array<i64: 128, 128>}, {pipeline_mode = #tpu.pipeline_mode<synchronous>, transform_indices = @transform_4, window_bounds = array<i64: 3, 128>}, {transform_indices = @transform_5, window_bounds = array<i64: 16, 128>}]} {
    %c0 = arith.constant 0 : index
    %c0_0 = arith.constant 0 : index
    %0 = vector.load %arg5[%c0, %c0_0] : memref<3x128xf32, #tpu.memory_space<vmem>>, vector<3x128xf32>
    %c0_1 = arith.constant 0 : index
    %c0_2 = arith.constant 0 : index
    %1 = vector.load %arg1[%c0_1, %c0_2] : memref<16x128xbf16, #tpu.memory_space<vmem>>, vector<16x128xbf16>
    %c0_3 = arith.constant 0 : index
    %c0_4 = arith.constant 0 : index
    %2 = vector.load %arg2[%c0_3, %c0_4] : memref<128x128xbf16, #tpu.memory_space<vmem>>, vector<128x128xbf16>
    %cst = arith.constant dense<0.000000e+00> : vector<16x128xf32>
    %3 = tpu.matmul %1, %2, %cst {dimension_numbers = #tpu.dot_dimension_numbers<[1], [0], [0], [1], [0, 0, 1, 1], [], []>} : vector<16x128xbf16>, vector<128x128xbf16>, vector<16x128xf32> -> vector<16x128xf32>
    %4 = vector.extract_strided_slice %0 {offsets = [0, 0], sizes = [1, 128], strides = [1, 1]} : vector<3x128xf32> to vector<1x128xf32>
    %5 = vector.broadcast %4 : vector<1x128xf32> to vector<16x128xf32>
    %6 = arith.addf %3, %5 : vector<16x128xf32>
    %cst_5 = arith.constant 0.000000e+00 : f32
    %7 = vector.broadcast %cst_5 : f32 to vector<16x128xf32>
    %8 = arith.maximumf %6, %7 : vector<16x128xf32>
    %c0_6 = arith.constant 0 : index
    %c0_7 = arith.constant 0 : index
    %9 = vector.load %arg3[%c0_6, %c0_7] : memref<128x128xbf16, #tpu.memory_space<vmem>>, vector<128x128xbf16>
    %10 = arith.truncf %8 : vector<16x128xf32> to vector<16x128xbf16>
    %cst_8 = arith.constant dense<0.000000e+00> : vector<16x128xf32>
    %11 = tpu.matmul %10, %9, %cst_8 {dimension_numbers = #tpu.dot_dimension_numbers<[1], [0], [0], [1], [0, 0, 1, 1], [], []>} : vector<16x128xbf16>, vector<128x128xbf16>, vector<16x128xf32> -> vector<16x128xf32>
    %12 = vector.extract_strided_slice %0 {offsets = [1, 0], sizes = [1, 128], strides = [1, 1]} : vector<3x128xf32> to vector<1x128xf32>
    %13 = vector.broadcast %12 : vector<1x128xf32> to vector<16x128xf32>
    %14 = arith.addf %11, %13 : vector<16x128xf32>
    %15 = math.tanh %14 : vector<16x128xf32>
    %c0_9 = arith.constant 0 : index
    %c0_10 = arith.constant 0 : index
    %16 = vector.load %arg4[%c0_9, %c0_10] : memref<128x128xbf16, #tpu.memory_space<vmem>>, vector<128x128xbf16>
    %17 = arith.truncf %15 : vector<16x128xf32> to vector<16x128xbf16>
    %cst_11 = arith.constant dense<0.000000e+00> : vector<16x128xf32>
    %18 = tpu.matmul %17, %16, %cst_11 {dimension_numbers = #tpu.dot_dimension_numbers<[1], [0], [0], [1], [0, 0, 1, 1], [], []>} : vector<16x128xbf16>, vector<128x128xbf16>, vector<16x128xf32> -> vector<16x128xf32>
    %19 = vector.extract_strided_slice %0 {offsets = [2, 0], sizes = [1, 128], strides = [1, 1]} : vector<3x128xf32> to vector<1x128xf32>
    %20 = vector.broadcast %19 : vector<1x128xf32> to vector<16x128xf32>
    %21 = arith.addf %18, %20 : vector<16x128xf32>
    %c0_12 = arith.constant 0 : index
    %c0_13 = arith.constant 0 : index
    %22 = vector.load %arg6[%c0_12, %c0_13] : memref<16x128xf32, #tpu.memory_space<vmem>>, vector<16x128xf32>
    tpu.vector_store %arg6[%c0_12, %c0_13], %21 {strides = array<i32>} : memref<16x128xf32, #tpu.memory_space<vmem>>, vector<16x128xf32>,
    return
  }
  func.func @transform_0(%arg0: i32) -> (i32, i32) {
    %c0_i32 = arith.constant 0 : i32
    %c0_i32_0 = arith.constant 0 : i32
    return %arg0, %c0_i32 : i32, i32
  }
  func.func @transform_1(%arg0: i32) -> (i32, i32) {
    %c0_i32 = arith.constant 0 : i32
    %c0_i32_0 = arith.constant 0 : i32
    %c0_i32_1 = arith.constant 0 : i32
    return %c0_i32, %c0_i32_0 : i32, i32
  }
  func.func @transform_2(%arg0: i32) -> (i32, i32) {
    %c0_i32 = arith.constant 0 : i32
    %c0_i32_0 = arith.constant 0 : i32
    %c0_i32_1 = arith.constant 0 : i32
    return %c0_i32, %c0_i32_0 : i32, i32
  }
  func.func @transform_3(%arg0: i32) -> (i32, i32) {
    %c0_i32 = arith.constant 0 : i32
    %c0_i32_0 = arith.constant 0 : i32
    %c0_i32_1 = arith.constant 0 : i32
    return %c0_i32, %c0_i32_0 : i32, i32
  }
  func.func @transform_4(%arg0: i32) -> (i32, i32) {
    %c0_i32 = arith.constant 0 : i32
    %c0_i32_0 = arith.constant 0 : i32
    %c0_i32_1 = arith.constant 0 : i32
    return %c0_i32, %c0_i32_0 : i32, i32
  }
  func.func @transform_5(%arg0: i32) -> (i32, i32) {
    %c0_i32 = arith.constant 0 : i32
    %c0_i32_0 = arith.constant 0 : i32
    return %arg0, %c0_i32 : i32, i32
  }
}

</mosaic_0001>

<bundles_post_ra>
// kernel: tpu_custom_call.1
= control target key start
LH: loop header
LB: loop body
LE: loop exit
PB: predicated region body
PF: predicated region fallthrough
CT: control target
= control target key end

     0   :  { %10 = vsyncpa [#allocation3], 0  ;;  %s870_s0 = inlined_call_operand.hbm [shape: bf16[16,128], index: 0, kind: input, shape index: {}]   ;;  %s871_s1 = inlined_call_operand.hbm [shape: bf16[128,128], index: 1, kind: input, shape index: {}]   ;;  %s872_s2 = inlined_call_operand.hbm [shape: bf16[128,128], index: 2, kind: input, shape index: {}]   ;;  %s873_s3 = inlined_call_operand.hbm [shape: bf16[128,128], index: 3, kind: input, shape index: {}]   ;;  %s874_s4 = inlined_call_operand.vmem [shape: f32[3,128], index: 4, kind: input, shape index: {}]   ;;  %s875_s5 = inlined_call_operand.hbm [shape: f32[16,128], index: 5, kind: output, shape index: {}]  }
   0x1   :  { %11 = vsyncpa [#allocation6], 0 }
   0x2   :  { %12 = vsyncpa [#allocation9], 0 }
   0x3   :  { %13 = vsyncpa [#allocation4], 0  ;;  %s710_s18 = smov [#allocation5]   ;;  %s711_s20 = smov [#allocation2]  }
   0x4   :  { %s31_s19 = sshll.u32 %s710_s18, 4  ;;  %s19_s21 = sshll.u32 %s711_s20, 4  ;;  %s32_s19 = int_to_ptr.vmem [resolvable:$true] %s31_s19  ;;  %s751_s21 = int_to_ptr.vmem [resolvable:$true] %s19_s21 }
   0x5   :  { %s592_s24 = scalar_lea.hbm %s871_s1, 1024 }
   0x6   :  { %p593_p0 = scmp.ne.s32.totalorder %s871_s1, %s592_s24  ;;  %p596_p1 = scmp.lt.u32.totalorder %s592_s24, %s871_s1 }
   0x8   :  { %p598_p2 = pnand %p596_p1, %p593_p0 }
   0xa   :  { %601 = shalt.err (!%p598_p2)
}
   0xb   :  { %s602_s29 = scalar_lea.vmem %s32_s19, 1024  ;;  %p607_p4 = scmp.lt.s32.totalorder %s32_s19, %s32_s19 }
   0xc   :  { %p603_p3 = scmp.ne.s32.totalorder %s32_s19, %s602_s29  ;;  %p608_p5 = scmp.lt.s32.totalorder %s602_s29, %s602_s29 }
   0xe   :  { %p609_p6 = por %p608_p5, %p607_p4 }
  0x10   :  { %p610_p7 = pnand %p609_p6, %p603_p3 }
  0x12   :  { %613 = shalt.err (!%p610_p7)
}
  0x13   :  { %s712_s30 = smov 64   ;;  %s713_s6 = smov 4  }
  0x14   :  { %37 = dma.hbm_to_vmem [thread:$0]  %s871_s1, 1024, %s32_s19, [#allocation6], %s712_s30, %s712_s30, %s713_s6  }
  0x15   :  { %s614_s11 = scalar_lea.hbm %s870_s0, 128 }
  0x16   :  { %p615_p8 = scmp.ne.s32.totalorder %s870_s0, %s614_s11  ;;  %p618_p9 = scmp.lt.u32.totalorder %s614_s11, %s870_s0 }
  0x18   :  { %p620_p10 = pnand %p618_p9, %p615_p8 }
  0x1a   :  { %623 = shalt.err (!%p620_p10)
}
  0x1b   :  { %s624_s16 = scalar_lea.vmem %s751_s21, 128  ;;  %p629_p12 = scmp.lt.s32.totalorder %s751_s21, %s751_s21 }
  0x1c   :  { %p625_p11 = scmp.ne.s32.totalorder %s751_s21, %s624_s16  ;;  %p630_p13 = scmp.lt.s32.totalorder %s624_s16, %s624_s16 }
  0x1e   :  { %p631_p0 = por %p630_p13, %p629_p12 }
  0x20   :  { %p632_p1 = pnand %p631_p0, %p625_p11 }
  0x22   :  { %635 = shalt.err (!%p632_p1)
}
  0x23   :  { %25 = dma.hbm_to_vmem [thread:$0]  %s870_s0, 128, %s751_s21, [#allocation3], %s712_s30, %s712_s30, %s713_s6  }
  0x24   :  { %s714_s18 = smov [#allocation7]   ;;  %s715_s20 = smov [#allocation8]  }
  0x25   :  { %s43_s19 = sshll.u32 %s714_s18, 4  ;;  %s55_s22 = sshll.u32 %s715_s20, 4  ;;  %s44_s19 = int_to_ptr.vmem [resolvable:$true] %s43_s19  ;;  %s788_s22 = int_to_ptr.vmem [resolvable:$true] %s55_s22 }
  0x26   :  { %s636_s25 = scalar_lea.hbm %s872_s2, 1024 }
  0x27   :  { %p637_p2 = scmp.ne.s32.totalorder %s872_s2, %s636_s25  ;;  %p640_p3 = scmp.lt.u32.totalorder %s636_s25, %s872_s2 }
  0x29   :  { %p642_p4 = pnand %p640_p3, %p637_p2 }
  0x2b   :  { %645 = shalt.err (!%p642_p4)
}
  0x2c   :  { %s646_s0 = scalar_lea.vmem %s44_s19, 1024  ;;  %p651_p6 = scmp.lt.s32.totalorder %s44_s19, %s44_s19 }
  0x2d   :  { %p647_p5 = scmp.ne.s32.totalorder %s44_s19, %s646_s0  ;;  %p652_p7 = scmp.lt.s32.totalorder %s646_s0, %s646_s0 }
  0x2f   :  { %p653_p8 = por %p652_p7, %p651_p6 }
  0x31   :  { %p654_p9 = pnand %p653_p8, %p647_p5 }
  0x33   :  { %657 = shalt.err (!%p654_p9)
}
  0x34   :  { %49 = dma.hbm_to_vmem [thread:$0]  %s872_s2, 1024, %s44_s19, [#allocation6], %s712_s30, %s712_s30, %s713_s6  }
  0x35   :  { %s658_s10 = scalar_lea.hbm %s873_s3, 1024 }
  0x36   :  { %p659_p10 = scmp.ne.s32.totalorder %s873_s3, %s658_s10  ;;  %p662_p11 = scmp.lt.u32.totalorder %s658_s10, %s873_s3 }
  0x38   :  { %p664_p12 = pnand %p662_p11, %p659_p10 }
  0x3a   :  { %667 = shalt.err (!%p664_p12)
}
  0x3b   :  { %s668_s15 = scalar_lea.vmem %s788_s22, 1024  ;;  %p673_p0 = scmp.lt.s32.totalorder %s788_s22, %s788_s22 }
  0x3c   :  { %p669_p13 = scmp.ne.s32.totalorder %s788_s22, %s668_s15  ;;  %p674_p1 = scmp.lt.s32.totalorder %s668_s15, %s668_s15 }
  0x3e   :  { %p675_p2 = por %p674_p1, %p673_p0 }
  0x40   :  { %p676_p3 = pnand %p675_p2, %p669_p13 }
  0x42   :  { %679 = shalt.err (!%p676_p3)
}
  0x43   :  { %61 = dma.hbm_to_vmem [thread:$0]  %s873_s3, 1024, %s788_s22, [#allocation9], %s712_s30, %s712_s30, %s713_s6  }
  0x44   :  { %702 = dma.done.wait [#allocation3], 128  }
  0x45   :  { %703 = vsyncadd [#allocation3], 4294967168 }
  0x46   :  { %704 = dma.done.wait [#allocation6], 2048  }
  0x47   :  { %705 = vsyncadd [#allocation6], 4294965248 }
  0x48   :  { %706 = dma.done.wait [#allocation9], 1024  }
  0x49   :  { %707 = vsyncadd [#allocation9], 4294966272  ;;  %v716_v0 = vmov 0.0   ;;  %vm717_vm0 = vmmov 0   ;;  %v563_v1 = vld [vmem:[#allocation5] sm:$0xff]   ;;  %v564_v2 = vld [vmem:[#allocation5 + $0x8] sm:$0xff]   ;;  %v96_v22 = vlaneseq }
  0x4a   :  { %492 = vmatprep.subr.bf16.mxu0 %v716_v0  ;;  %508 = vmatprep.mubr.msk.bf16.mxu0 %vm717_vm0, %v716_v0  ;;  %v565_v3 = vld [vmem:[#allocation5 + $0x10] sm:$0xff]   ;;  %v572_v4 = vld [vmem:[#allocation7] sm:$0xff]   ;;  %v566_v5 = vld [vmem:[#allocation5 + $0x18] sm:$0xff]  }
  0x4b   :  { %512 = vmatprep.subr.bf16.mxu1 %v716_v0  ;;  %528 = vmatprep.mubr.msk.bf16.mxu1 %vm717_vm0, %v716_v0  ;;  %v573_v6 = vld [vmem:[#allocation7 + $0x8] sm:$0xff]   ;;  %v567_v7 = vld [vmem:[#allocation5 + $0x20] sm:$0xff]   ;;  %v574_v8 = vld [vmem:[#allocation7 + $0x10] sm:$0xff]   ;;  %v97_v23 = vshrl.u32 %v96_v22, 7 }
  0x4c   :  { %493 = vmatpush3.bf16.msra.mxu0 %v563_v1  ;;  %513 = vmatpush3.bf16.msra.mxu1 %v572_v4  ;;  %v568_v9 = vld [vmem:[#allocation5 + $0x28] sm:$0xff]   ;;  %v575_v10 = vld [vmem:[#allocation7 + $0x18] sm:$0xff]   ;;  %v569_v11 = vld [vmem:[#allocation5 + $0x30] sm:$0xff]  }
  0x4d   :  { %494 = vmatprep.subr.bf16.mxu0 %v716_v0  ;;  %514 = vmatprep.subr.bf16.mxu1 %v716_v0  ;;  %v576_v12 = vld [vmem:[#allocation7 + $0x20] sm:$0xff]   ;;  %v570_v13 = vld [vmem:[#allocation5 + $0x38] sm:$0xff]   ;;  %v577_v14 = vld [vmem:[#allocation7 + $0x28] sm:$0xff]   ;;  %v98_v24 = vsub.s32 0, %v97_v23  ;;  %v216_v40 = vsub.s32 1, %v97_v23  ;;  %v328_v51 = vsub.s32 2, %v97_v23 }
  0x4e   :  { %v571_v15 = vld [vmem:[#allocation2] sm:$0xff]   ;;  %v578_v16 = vld [vmem:[#allocation7 + $0x30] sm:$0xff]   ;;  %v580_v18 = vld [vmem:[#allocation8] sm:$0xff]  }
  0x4f   :  { %v579_v17 = vld [vmem:[#allocation7 + $0x38] sm:$0xff]   ;;  %v581_v19 = vld [vmem:[#allocation8 + $0x8] sm:$0xff]   ;;  %v582_v20 = vld [vmem:[#allocation8 + $0x10] sm:$0xff]  }
  0x50   :  { %495 = vmatpush3.bf16.msra.mxu0 %v564_v2  ;;  %515 = vmatpush3.bf16.msra.mxu1 %v573_v6  ;;  %v583_v21 = vld [vmem:[#allocation8 + $0x18] sm:$0xff]   ;;  %v584_v36 = vld [vmem:[#allocation8 + $0x20] sm:$0xff]   ;;  %v585_v37 = vld [vmem:[#allocation8 + $0x28] sm:$0xff]  }
  0x51   :  { %496 = vmatprep.subr.bf16.mxu0 %v716_v0  ;;  %516 = vmatprep.subr.bf16.mxu1 %v716_v0  ;;  %v77_v25 = vld [vmem:[%s874_s4] sm:$0x7]  ;;  %v586_v38 = vld [vmem:[#allocation8 + $0x30] sm:$0xff]   ;;  %s718_s4 = smov [#allocation10]  }
  0x52   :  { %v99_v26 = vrot.slane %v77_v25, %v98_v24  ;;  %v587_v39 = vld [vmem:[#allocation8 + $0x38] sm:$0xff]   ;;  %v217_v41 = vrot.slane %v77_v25, %v216_v40  ;;  %v329_v52 = vrot.slane %v77_v25, %v328_v51  ;;  %s426_s6 = sshll.u32 %s718_s4, 4  ;;  %s427_s6 = int_to_ptr.vmem [resolvable:$true] %s426_s6 }
  0x53   :  { %s680_s1 = scalar_lea.vmem %s427_s6, 256  ;;  %p685_p5 = scmp.lt.s32.totalorder %s427_s6, %s427_s6 }
  0x54   :  { %497 = vmatpush3.bf16.msra.mxu0 %v565_v3  ;;  %517 = vmatpush3.bf16.msra.mxu1 %v574_v8  ;;  %p681_p4 = scmp.ne.s32.totalorder %s427_s6, %s680_s1  ;;  %p686_p6 = scmp.lt.s32.totalorder %s680_s1, %s680_s1 }
  0x55   :  { %498 = vmatprep.subr.bf16.mxu0 %v716_v0  ;;  %518 = vmatprep.subr.bf16.mxu1 %v716_v0 }
  0x56   :  { %p687_p7 = por %p686_p6, %p685_p5 }
  0x58   :  { %499 = vmatpush3.bf16.msra.mxu0 %v566_v5  ;;  %519 = vmatpush3.bf16.msra.mxu1 %v575_v10  ;;  %p688_p8 = pnand %p687_p7, %p681_p4 }
  0x59   :  { %500 = vmatprep.subr.bf16.mxu0 %v716_v0  ;;  %520 = vmatprep.subr.bf16.mxu1 %v716_v0 }
  0x5c   :  { %501 = vmatpush3.bf16.msra.mxu0 %v567_v7  ;;  %521 = vmatpush3.bf16.msra.mxu1 %v576_v12 }
  0x5d   :  { %502 = vmatprep.subr.bf16.mxu0 %v716_v0  ;;  %522 = vmatprep.subr.bf16.mxu1 %v716_v0 }
  0x60   :  { %503 = vmatpush3.bf16.msra.mxu0 %v568_v9  ;;  %523 = vmatpush3.bf16.msra.mxu1 %v577_v14 }
  0x61   :  { %504 = vmatprep.subr.bf16.mxu0 %v716_v0  ;;  %524 = vmatprep.subr.bf16.mxu1 %v716_v0 }
  0x64   :  { %505 = vmatpush3.bf16.msra.mxu0 %v569_v11  ;;  %525 = vmatpush3.bf16.msra.mxu1 %v578_v16 }
  0x65   :  { %506 = vmatprep.subr.bf16.mxu0 %v716_v0  ;;  %526 = vmatprep.subr.bf16.mxu1 %v716_v0 }
  0x68   :  { %507 = vmatpush3.bf16.msra.mxu0 %v570_v13  ;;  %527 = vmatpush3.bf16.msra.mxu1 %v579_v17 }
  0x69   :  { %532 = vmatprep.subr.bf16.mxu0 %v716_v0 }
  0x6b   :  { %509 = vmatmul.mubr.bf16.vlgmr.msra.gmra.mrb[0].mxu0 %v571_v15 }
  0x6c   :  { %548 = vmatprep.mubr.msk.bf16.mxu0 %vm717_vm0, %v716_v0  ;;  %533 = vmatpush3.bf16.msra.mxu0 %v580_v18 }
  0x6d   :  { %534 = vmatprep.subr.bf16.mxu0 %v716_v0 }
  0x70   :  { %535 = vmatpush3.bf16.msra.mxu0 %v581_v19 }
  0x71   :  { %536 = vmatprep.subr.bf16.mxu0 %v716_v0 }
  0x74   :  { %537 = vmatpush3.bf16.msra.mxu0 %v582_v20 }
  0x75   :  { %538 = vmatprep.subr.bf16.mxu0 %v716_v0 }
  0x78   :  { %539 = vmatpush3.bf16.msra.mxu0 %v583_v21 }
  0x79   :  { %540 = vmatprep.subr.bf16.mxu0 %v716_v0 }
  0x7c   :  { %541 = vmatpush3.bf16.msra.mxu0 %v584_v36 }
  0x7d   :  { %542 = vmatprep.subr.bf16.mxu0 %v716_v0 }
  0x80   :  { %543 = vmatpush3.bf16.msra.mxu0 %v585_v37 }
  0x81   :  { %544 = vmatprep.subr.bf16.mxu0 %v716_v0 }
  0x84   :  { %545 = vmatpush3.bf16.msra.mxu0 %v586_v38 }
  0x85   :  { %546 = vmatprep.subr.bf16.mxu0 %v716_v0 }
  0x88   :  { %547 = vmatpush3.bf16.msra.mxu0 %v587_v39 }
 0x13e   :  { %v188_v27 = vpop.f32.mrb[0].mxu0 }
 0x13f   :  { %v189_v28 = vadd.f32 %v188_v27, %v99_v26  ;;  %v510_v29 = vpop.f32.mrb[1].mxu0 }
 0x140   :  { %v191_v30 = vpop.f32.mrb[2].mxu0 }
 0x141   :  { %v192_v31 = vadd.f32 %v191_v30, %v99_v26  ;;  %v511_v32 = vpop.f32.mrb[3].mxu0  ;;  %v195_v33 = vmax.f32 %v189_v28, 0.0 }
 0x143   :  { %v196_v34 = vmax.f32 %v192_v31, 0.0 }
 0x145   :  { %v213_v35 = vpack.c.bf16 %v196_v34, %v195_v33 }
 0x147   :  { %529 = vmatmul.mubr.bf16.vlgmr.msra.gmra.mrb[0].mxu1 %v213_v35 }
 0x21a   :  { %v300_v42 = vpop.f32.mrb[0].mxu1 }
 0x21b   :  { %v301_v43 = vadd.f32 %v300_v42, %v217_v41  ;;  %v530_v44 = vpop.f32.mrb[1].mxu1 }
 0x21c   :  { %v303_v45 = vpop.f32.mrb[2].mxu1 }
 0x21d   :  { %v304_v46 = vadd.f32 %v303_v45, %v217_v41  ;;  %v531_v47 = vpop.f32.mrb[3].mxu1  ;;  %588 = vtanh.f32 %v301_v43 }
 0x21f   :  { %590 = vtanh.f32 %v304_v46 }
 0x227   :  { %v589_v48 = vpop.eup %588 }
 0x229   :  { %v591_v49 = vpop.eup %590 }
 0x22a   :  { %v325_v50 = vpack.c.bf16 %v591_v49, %v589_v48 }
 0x22c   :  { %549 = vmatmul.mubr.bf16.vlgmr.msra.gmra.mrb[4].mxu0 %v325_v50 }
 0x2ff   :  { %v412_v53 = vpop.f32.mrb[4].mxu0 }
 0x300   :  { %v413_v54 = vadd.f32 %v412_v53, %v329_v52  ;;  %v550_v55 = vpop.f32.mrb[5].mxu0 }
 0x301   :  { %v415_v56 = vpop.f32.mrb[6].mxu0 }
 0x302   :  { %419 = vst [vmem:[#allocation10] sm:$0xff] %v413_v54  ;;  %v416_v57 = vadd.f32 %v415_v56, %v329_v52  ;;  %v551_v58 = vpop.f32.mrb[7].mxu0 }
 0x304   :  { %420 = vst [vmem:[#allocation10 + $0x8] sm:$0xff] %v416_v57 }
 0x305   :  { %691 = shalt.err (!%p688_p8)
}
 0x306   :  { %s692_s19 = scalar_lea.hbm %s875_s5, 256 }
 0x307   :  { %p693_p9 = scmp.ne.s32.totalorder %s875_s5, %s692_s19  ;;  %p696_p10 = scmp.lt.u32.totalorder %s692_s19, %s875_s5 }
 0x309   :  { %p698_p11 = pnand %p696_p10, %p693_p9 }
 0x30b   :  { %701 = shalt.err (!%p698_p11)
}
 0x30c   :  { %s719_s25 = smov 128   ;;  %s720_s26 = smov 8  }
 0x30d   :  { %432 = dma.vmem_to_hbm [thread:$0]  %s427_s6, 256, %s875_s5, [#allocation4], %s719_s25, %s719_s25, %s720_s26  }
 0x30e   :  { %708 = dma.done.wait [#allocation4], 256  }
 0x30f   :  { %709 = vsyncadd [#allocation4], 4294967040 }
 0x310   :  { %436 = vsyncpa [#allocation3], 1 }
 0x311   :  { %437 = vsyncpa [#allocation6], 1 }
 0x312   :  { %438 = vsyncpa [#allocation9], 1 }
 0x313   :  { %439 = vsyncpa [#allocation4], 1 }

</bundles_post_ra>
